<compile_context>
chip_gen: v5e
topology: v5e:2x2
jax: 0.10.0
libtpu: 0.0.40
codegen_flags: <defaults>
</compile_context>

<pallas_src>
import jax
import jax.numpy as jnp
from jax.experimental import pallas as pl
from jax.experimental.pallas import tpu as pltpu

LANE = 128


def _round_up(n, m):
    return (n + m - 1) // m * m


def dqn_kernel(x_ref, w_ref, b_ref, out_ref):
    # x_ref:   [TILE_B, P]   (batch tile, lane-padded features)
    # w_ref:   [4, P, P]     (packed, pre-transposed [in, out] weights, resident)
    # b_ref:   [4, P]        (packed biases, resident)
    # out_ref: [TILE_B, P]   (lane-dense padded Q-values)
    x = x_ref[...]
    b = b_ref[...]

    h = jnp.dot(x, w_ref[0], preferred_element_type=jnp.float32) + b[0:1, :]
    h = jnp.maximum(h, 0.0)

    h = jnp.dot(h, w_ref[1], preferred_element_type=jnp.float32) + b[1:2, :]
    h = jnp.maximum(h, 0.0)

    h = jnp.dot(h, w_ref[2], preferred_element_type=jnp.float32) + b[2:3, :]
    h = jnp.maximum(h, 0.0)

    out = jnp.dot(h, w_ref[3], preferred_element_type=jnp.float32) + b[3:4, :]
    out_ref[...] = out.astype(out_ref.dtype)


def pack_params(params):
    """One-time prep (outside the hot path): transpose PyTorch [out, in] weights
    to [in, out], zero-pad all feature dims to a multiple of 128, and stack
    weights/biases into two slabs."""
    ws = [params["w1"], params["w2"], params["w3"], params["w4"]]
    bs = [params["b1"], params["b2"], params["b3"], params["b4"]]

    # The reference forward() feeds fc3's output into fc4, but fc4 was built
    # as Linear(fc2_dims, n_actions) -> only valid when fc2_dims == fc3_dims.
    assert ws[3].shape[1] == ws[2].shape[0], (
        "fc4 in-features must equal fc3 out-features (requires fc2_dims == fc3_dims)")

    in_dim = ws[0].shape[1]
    n_actions = ws[3].shape[0]
    dims = [in_dim] + [w.shape[0] for w in ws]
    P = _round_up(max(dims), LANE)

    w_slab = jnp.stack([
        jnp.zeros((P, P), jnp.float32).at[:w.shape[1], :w.shape[0]].set(w.T)
        for w in ws
    ])  # [4, P, P]
    b_slab = jnp.stack([
        jnp.zeros((P,), jnp.float32).at[:b.shape[0]].set(b) for b in bs
    ])  # [4, P]

    return dict(w_slab=w_slab, b_slab=b_slab,
                in_dim=in_dim, n_actions=n_actions, padded=P)


def dqn_forward(x, packed, *, tile_b=128):
    """x: [B, in_dim] float32; packed: output of pack_params()."""
    B = x.shape[0]
    P = packed["padded"]
    in_dim = packed["in_dim"]
    n_actions = packed["n_actions"]

    # Batch tile: 128 rows for real batches; tiny batches round up to 8 sublanes.
    tb = tile_b if B >= tile_b else _round_up(max(B, 1), 8)
    b_pad = _round_up(B, tb)

    # Zero-pad input to lane-dense [b_pad, P] (padded lanes/rows are exact zeros,
    # so the math is unchanged).
    x_p = jnp.zeros((b_pad, P), jnp.float32).at[:B, :in_dim].set(x)

    x_spec = pl.BlockSpec((tb, P), lambda i: (i, 0))          # batch-tiled
    w_spec = pl.BlockSpec((4, P, P), lambda i: (0, 0, 0))     # resident across grid
    b_spec = pl.BlockSpec((4, P), lambda i: (0, 0))           # resident across grid
    out_spec = pl.BlockSpec((tb, P), lambda i: (i, 0))

    out_padded = pl.pallas_call(
        dqn_kernel,
        out_shape=jax.ShapeDtypeStruct((b_pad, P), jnp.float32),
        grid=(b_pad // tb,),
        in_specs=[x_spec, w_spec, b_spec],
        out_specs=out_spec,
        compiler_params=pltpu.CompilerParams(
            dimension_semantics=("parallel",)),
    )(x_p, packed["w_slab"], packed["b_slab"])

    return out_padded[:B, :n_actions]


def init_linear(key, in_dim, out_dim):
    # PyTorch nn.Linear default init: U(-1/sqrt(in_dim), 1/sqrt(in_dim))
    kw, kb = jax.random.split(key)
    bound = 1.0 / jnp.sqrt(jnp.float32(in_dim))
    w = jax.random.uniform(kw, (out_dim, in_dim), jnp.float32, -bound, bound)
    b = jax.random.uniform(kb, (out_dim,), jnp.float32, -bound, bound)
    return w, b


if __name__ == "__main__":
    # Small shapes consistent with the module's forward.
    batch = 2
    input_dims = (16,)     # *input_dims -> fc1 input features
    fc1_dims = 32
    fc2_dims = 32
    fc3_dims = 32          # must equal fc2_dims for the reference forward()
    n_actions = 8

    key = jax.random.PRNGKey(0)
    k_x, k1, k2, k3, k4 = jax.random.split(key, 5)

    w1, b1 = init_linear(k1, input_dims[0], fc1_dims)
    w2, b2 = init_linear(k2, fc1_dims, fc2_dims)
    w3, b3 = init_linear(k3, fc2_dims, fc3_dims)
    w4, b4 = init_linear(k4, fc2_dims, n_actions)   # fc4: Linear(fc2_dims, n_actions)

    params = dict(w1=w1, b1=b1, w2=w2, b2=b2, w3=w3, b3=b3, w4=w4, b4=b4)

    # One-time packing (transpose + pad + stack) outside the per-step forward.
    packed = pack_params(params)

    x = jax.random.normal(k_x, (batch, input_dims[0]), jnp.float32)

    fwd = jax.jit(lambda xx: dqn_forward(xx, packed))
    actions = jax.block_until_ready(fwd(x))

    # Reference check in plain JAX (same math as the PyTorch forward).
    h = jnp.maximum(x @ w1.T + b1, 0.0)
    h = jnp.maximum(h @ w2.T + b2, 0.0)
    h = jnp.maximum(h @ w3.T + b3, 0.0)
    ref = h @ w4.T + b4

    assert actions.shape == (batch, n_actions)
    assert jnp.allclose(actions, ref, atol=1e-5, rtol=1e-5)

    print("KERNEL_OK")
</pallas_src>

<mosaic_0001>
module attributes {stable_mosaic.version = 11 : i64} {
  func.func @dqn_kernel(%arg0: i32, %arg1: memref<8x128xf32, #tpu.memory_space<vmem>>, %arg2: memref<4x128x128xf32, #tpu.memory_space<vmem>>, %arg3: memref<4x128xf32, #tpu.memory_space<vmem>>, %arg4: memref<8x128xf32, #tpu.memory_space<vmem>>) attributes {dimension_semantics = [#tpu.dimension_semantics<parallel>], iteration_bounds = array<i64: 1>, scalar_prefetch = 0 : i64, scratch_operands = 0 : i64, tpu.core_type = #tpu.core_type<tc>, window_params = [{transform_indices = @transform_0, window_bounds = array<i64: 8, 128>}, {pipeline_mode = #tpu.pipeline_mode<synchronous>, transform_indices = @transform_1, window_bounds = array<i64: 4, 128, 128>}, {pipeline_mode = #tpu.pipeline_mode<synchronous>, transform_indices = @transform_2, window_bounds = array<i64: 4, 128>}, {transform_indices = @transform_3, window_bounds = array<i64: 8, 128>}]} {
    %c0 = arith.constant 0 : index
    %c0_0 = arith.constant 0 : index
    %0 = vector.load %arg1[%c0, %c0_0] : memref<8x128xf32, #tpu.memory_space<vmem>>, vector<8x128xf32>
    %c0_1 = arith.constant 0 : index
    %c0_2 = arith.constant 0 : index
    %1 = vector.load %arg3[%c0_1, %c0_2] : memref<4x128xf32, #tpu.memory_space<vmem>>, vector<4x128xf32>
    %c0_3 = arith.constant 0 : index
    %c0_4 = arith.constant 0 : index
    %c0_5 = arith.constant 0 : index
    %2 = vector.load %arg2[%c0_3, %c0_4, %c0_5] : memref<4x128x128xf32, #tpu.memory_space<vmem>>, vector<1x128x128xf32>
    %3 = vector.shape_cast %2 : vector<1x128x128xf32> to vector<128x128xf32>
    %cst = arith.constant dense<0.000000e+00> : vector<8x128xf32>
    %4 = tpu.matmul %0, %3, %cst {dimension_numbers = #tpu.dot_dimension_numbers<[1], [0], [0], [1], [0, 0, 1, 1], [], []>} : vector<8x128xf32>, vector<128x128xf32>, vector<8x128xf32> -> vector<8x128xf32>
    %5 = vector.extract_strided_slice %1 {offsets = [0, 0], sizes = [1, 128], strides = [1, 1]} : vector<4x128xf32> to vector<1x128xf32>
    %6 = vector.broadcast %5 : vector<1x128xf32> to vector<8x128xf32>
    %7 = arith.addf %4, %6 : vector<8x128xf32>
    %cst_6 = arith.constant 0.000000e+00 : f32
    %8 = vector.broadcast %cst_6 : f32 to vector<8x128xf32>
    %9 = arith.maximumf %7, %8 : vector<8x128xf32>
    %c1 = arith.constant 1 : index
    %c0_7 = arith.constant 0 : index
    %c0_8 = arith.constant 0 : index
    %10 = vector.load %arg2[%c1, %c0_7, %c0_8] : memref<4x128x128xf32, #tpu.memory_space<vmem>>, vector<1x128x128xf32>
    %11 = vector.shape_cast %10 : vector<1x128x128xf32> to vector<128x128xf32>
    %cst_9 = arith.constant dense<0.000000e+00> : vector<8x128xf32>
    %12 = tpu.matmul %9, %11, %cst_9 {dimension_numbers = #tpu.dot_dimension_numbers<[1], [0], [0], [1], [0, 0, 1, 1], [], []>} : vector<8x128xf32>, vector<128x128xf32>, vector<8x128xf32> -> vector<8x128xf32>
    %13 = vector.extract_strided_slice %1 {offsets = [1, 0], sizes = [1, 128], strides = [1, 1]} : vector<4x128xf32> to vector<1x128xf32>
    %14 = vector.broadcast %13 : vector<1x128xf32> to vector<8x128xf32>
    %15 = arith.addf %12, %14 : vector<8x128xf32>
    %cst_10 = arith.constant 0.000000e+00 : f32
    %16 = vector.broadcast %cst_10 : f32 to vector<8x128xf32>
    %17 = arith.maximumf %15, %16 : vector<8x128xf32>
    %c2 = arith.constant 2 : index
    %c0_11 = arith.constant 0 : index
    %c0_12 = arith.constant 0 : index
    %18 = vector.load %arg2[%c2, %c0_11, %c0_12] : memref<4x128x128xf32, #tpu.memory_space<vmem>>, vector<1x128x128xf32>
    %19 = vector.shape_cast %18 : vector<1x128x128xf32> to vector<128x128xf32>
    %cst_13 = arith.constant dense<0.000000e+00> : vector<8x128xf32>
    %20 = tpu.matmul %17, %19, %cst_13 {dimension_numbers = #tpu.dot_dimension_numbers<[1], [0], [0], [1], [0, 0, 1, 1], [], []>} : vector<8x128xf32>, vector<128x128xf32>, vector<8x128xf32> -> vector<8x128xf32>
    %21 = vector.extract_strided_slice %1 {offsets = [2, 0], sizes = [1, 128], strides = [1, 1]} : vector<4x128xf32> to vector<1x128xf32>
    %22 = vector.broadcast %21 : vector<1x128xf32> to vector<8x128xf32>
    %23 = arith.addf %20, %22 : vector<8x128xf32>
    %cst_14 = arith.constant 0.000000e+00 : f32
    %24 = vector.broadcast %cst_14 : f32 to vector<8x128xf32>
    %25 = arith.maximumf %23, %24 : vector<8x128xf32>
    %c3 = arith.constant 3 : index
    %c0_15 = arith.constant 0 : index
    %c0_16 = arith.constant 0 : index
    %26 = vector.load %arg2[%c3, %c0_15, %c0_16] : memref<4x128x128xf32, #tpu.memory_space<vmem>>, vector<1x128x128xf32>
    %27 = vector.shape_cast %26 : vector<1x128x128xf32> to vector<128x128xf32>
    %cst_17 = arith.constant dense<0.000000e+00> : vector<8x128xf32>
    %28 = tpu.matmul %25, %27, %cst_17 {dimension_numbers = #tpu.dot_dimension_numbers<[1], [0], [0], [1], [0, 0, 1, 1], [], []>} : vector<8x128xf32>, vector<128x128xf32>, vector<8x128xf32> -> vector<8x128xf32>
    %29 = vector.extract_strided_slice %1 {offsets = [3, 0], sizes = [1, 128], strides = [1, 1]} : vector<4x128xf32> to vector<1x128xf32>
    %30 = vector.broadcast %29 : vector<1x128xf32> to vector<8x128xf32>
    %31 = arith.addf %28, %30 : vector<8x128xf32>
    %c0_18 = arith.constant 0 : index
    %c0_19 = arith.constant 0 : index
    %32 = vector.load %arg4[%c0_18, %c0_19] : memref<8x128xf32, #tpu.memory_space<vmem>>, vector<8x128xf32>
    tpu.vector_store %arg4[%c0_18, %c0_19], %31 {strides = array<i32>} : memref<8x128xf32, #tpu.memory_space<vmem>>, vector<8x128xf32>,
    return
  }
  func.func @transform_0(%arg0: i32) -> (i32, i32) {
    %c0_i32 = arith.constant 0 : i32
    %c0_i32_0 = arith.constant 0 : i32
    return %arg0, %c0_i32 : i32, i32
  }
  func.func @transform_1(%arg0: i32) -> (i32, i32, i32) {
    %c0_i32 = arith.constant 0 : i32
    %c0_i32_0 = arith.constant 0 : i32
    %c0_i32_1 = arith.constant 0 : i32
    %c0_i32_2 = arith.constant 0 : i32
    return %c0_i32, %c0_i32_0, %c0_i32_1 : i32, i32, i32
  }
  func.func @transform_2(%arg0: i32) -> (i32, i32) {
    %c0_i32 = arith.constant 0 : i32
    %c0_i32_0 = arith.constant 0 : i32
    %c0_i32_1 = arith.constant 0 : i32
    return %c0_i32, %c0_i32_0 : i32, i32
  }
  func.func @transform_3(%arg0: i32) -> (i32, i32) {
    %c0_i32 = arith.constant 0 : i32
    %c0_i32_0 = arith.constant 0 : i32
    return %arg0, %c0_i32 : i32, i32
  }
}

</mosaic_0001>

<bundles_post_ra>
// kernel: _lambda_.1
= control target key start
LH: loop header
LB: loop body
LE: loop exit
PB: predicated region body
PF: predicated region fallthrough
CT: control target
= control target key end

     0   :  { %8 = vsyncpa [#allocation3], 0  ;;  %s221_s15 = smov [#allocation2]   ;;  %s222_s17 = smov 128   ;;  %s256_s0 = inlined_call_operand.vmem [shape: f32[8,128], index: 0, kind: input, shape index: {}]   ;;  %s257_s1 = inlined_call_operand.hbm [shape: f32[4,128,128], index: 1, kind: input, shape index: {}]   ;;  %s258_s2 = inlined_call_operand.vmem [shape: f32[4,128], index: 2, kind: input, shape index: {}]   ;;  %s259_s3 = inlined_call_operand.vmem [shape: f32[8,128], index: 3, kind: output, shape index: {}]  }
   0x1   :  { %s15_s14 = sshll.u32 %s257_s1, 4  ;;  %s17_s16 = sshll.u32 %s221_s15, 4  ;;  %s16_s14 = int_to_ptr.hbm [resolvable:$true] %s15_s14  ;;  %s18_s16 = int_to_ptr.vmem [resolvable:$true] %s17_s16 }
   0x2   :  { %s223_s18 = smov 8  }
   0x3   :  { %23 = dma.hbm_to_vmem [thread:$0]  %s16_s14, 8192, %s18_s16, [#allocation3], %s222_s17, %s222_s17, %s223_s18  }
   0x4   :  { %219 = dma.done.wait [#allocation3], 8192  }
   0x5   :  { %220 = vsyncadd [#allocation3], 4294959104  ;;  %v47_v0 = vld [vmem:[#allocation2 + $0x78] sm:$0xff]  ;;  %v46_v1 = vld [vmem:[#allocation2 + $0x70] sm:$0xff] }
   0x6   :  { %49 = vmatpush.msra.mxu0 %v47_v0  ;;  %v45_v2 = vld [vmem:[#allocation2 + $0x68] sm:$0xff]  ;;  %v44_v3 = vld [vmem:[#allocation2 + $0x60] sm:$0xff]  ;;  %v86_v4 = vld [vmem:[#allocation2 + $0xf8] sm:$0xff] }
   0x7   :  { %v43_v5 = vld [vmem:[#allocation2 + $0x58] sm:$0xff]  ;;  %88 = vmatpush.msra.mxu1 %v86_v4  ;;  %v85_v6 = vld [vmem:[#allocation2 + $0xf0] sm:$0xff]  ;;  %v84_v7 = vld [vmem:[#allocation2 + $0xe8] sm:$0xff] }
   0x8   :  { %50 = vmatpush.msra.mxu0 %v46_v1  ;;  %v42_v8 = vld [vmem:[#allocation2 + $0x50] sm:$0xff]  ;;  %v83_v9 = vld [vmem:[#allocation2 + $0xe0] sm:$0xff]  ;;  %v41_v10 = vld [vmem:[#allocation2 + $0x48] sm:$0xff] }
   0x9   :  { %89 = vmatpush.msra.mxu1 %v85_v6  ;;  %v82_v11 = vld [vmem:[#allocation2 + $0xd8] sm:$0xff]  ;;  %v40_v12 = vld [vmem:[#allocation2 + $0x40] sm:$0xff]  ;;  %v81_v13 = vld [vmem:[#allocation2 + $0xd0] sm:$0xff] }
   0xa   :  { %51 = vmatpush.msra.mxu0 %v45_v2  ;;  %v39_v14 = vld [vmem:[#allocation2 + $0x38] sm:$0xff]  ;;  %v80_v15 = vld [vmem:[#allocation2 + $0xc8] sm:$0xff]  ;;  %v38_v16 = vld [vmem:[#allocation2 + $0x30] sm:$0xff] }
   0xb   :  { %90 = vmatpush.msra.mxu1 %v84_v7  ;;  %v79_v17 = vld [vmem:[#allocation2 + $0xc0] sm:$0xff]  ;;  %v37_v18 = vld [vmem:[#allocation2 + $0x28] sm:$0xff]  ;;  %v78_v19 = vld [vmem:[#allocation2 + $0xb8] sm:$0xff] }
   0xc   :  { %52 = vmatpush.msra.mxu0 %v44_v3  ;;  %v36_v20 = vld [vmem:[#allocation2 + $0x20] sm:$0xff]  ;;  %v77_v21 = vld [vmem:[#allocation2 + $0xb0] sm:$0xff]  ;;  %v35_v22 = vld [vmem:[#allocation2 + $0x18] sm:$0xff] }
   0xd   :  { %91 = vmatpush.msra.mxu1 %v83_v9  ;;  %v76_v23 = vld [vmem:[#allocation2 + $0xa8] sm:$0xff]  ;;  %v34_v24 = vld [vmem:[#allocation2 + $0x10] sm:$0xff]  ;;  %v75_v25 = vld [vmem:[#allocation2 + $0xa0] sm:$0xff] }
   0xe   :  { %53 = vmatpush.msra.mxu0 %v43_v5  ;;  %v33_v26 = vld [vmem:[#allocation2 + $0x8] sm:$0xff]  ;;  %v74_v27 = vld [vmem:[#allocation2 + $0x98] sm:$0xff]  ;;  %v32_v28 = vld [vmem:[#allocation2] sm:$0xff] }
   0xf   :  { %92 = vmatpush.msra.mxu1 %v82_v11  ;;  %v30_v29 = vld [vmem:[%s256_s0] sm:$0xff]  ;;  %v73_v30 = vld [vmem:[#allocation2 + $0x90] sm:$0xff]  ;;  %v72_v31 = vld [vmem:[#allocation2 + $0x88] sm:$0xff] }
  0x10   :  { %54 = vmatpush.msra.mxu0 %v42_v8  ;;  %v71_v32 = vld [vmem:[#allocation2 + $0x80] sm:$0xff]  ;;  %v125_v33 = vld [vmem:[#allocation2 + $0x178] sm:$0xff]  ;;  %v124_v34 = vld [vmem:[#allocation2 + $0x170] sm:$0xff] }
  0x11   :  { %93 = vmatpush.msra.mxu1 %v81_v13  ;;  %127 = vmatpush.msra.mxu2 %v125_v33  ;;  %v123_v35 = vld [vmem:[#allocation2 + $0x168] sm:$0xff]  ;;  %v122_v36 = vld [vmem:[#allocation2 + $0x160] sm:$0xff]  ;;  %v121_v37 = vld [vmem:[#allocation2 + $0x158] sm:$0xff] }
  0x12   :  { %55 = vmatpush.msra.mxu0 %v41_v10  ;;  %v120_v38 = vld [vmem:[#allocation2 + $0x150] sm:$0xff]  ;;  %v119_v39 = vld [vmem:[#allocation2 + $0x148] sm:$0xff]  ;;  %v118_v40 = vld [vmem:[#allocation2 + $0x140] sm:$0xff] }
  0x13   :  { %94 = vmatpush.msra.mxu1 %v80_v15  ;;  %128 = vmatpush.msra.mxu2 %v124_v34  ;;  %v117_v41 = vld [vmem:[#allocation2 + $0x138] sm:$0xff]  ;;  %v116_v42 = vld [vmem:[#allocation2 + $0x130] sm:$0xff]  ;;  %v115_v43 = vld [vmem:[#allocation2 + $0x128] sm:$0xff] }
  0x14   :  { %56 = vmatpush.msra.mxu0 %v40_v12  ;;  %v114_v44 = vld [vmem:[#allocation2 + $0x120] sm:$0xff]  ;;  %v113_v46 = vld [vmem:[#allocation2 + $0x118] sm:$0xff]  ;;  %v112_v51 = vld [vmem:[#allocation2 + $0x110] sm:$0xff] }
  0x15   :  { %95 = vmatpush.msra.mxu1 %v79_v17  ;;  %129 = vmatpush.msra.mxu2 %v123_v35  ;;  %v31_v45 = vld [vmem:[%s258_s2] sm:$0xf]  ;;  %v111_v52 = vld [vmem:[#allocation2 + $0x108] sm:$0xff]  ;;  %v164_v54 = vld [vmem:[#allocation2 + $0x1f8] sm:$0xff] }
  0x16   :  { %57 = vmatpush.msra.mxu0 %v39_v14  ;;  %v48_v47 = vperm.slane %v31_v45, 0  ;;  %v110_v53 = vld [vmem:[#allocation2 + $0x100] sm:$0xff]  ;;  %v163_v55 = vld [vmem:[#allocation2 + $0x1f0] sm:$0xff]  ;;  %166 = vmatpush.msra.mxu3 %v164_v54  ;;  %v162_v56 = vld [vmem:[#allocation2 + $0x1e8] sm:$0xff]  ;;  %v87_v3 = vperm.slane %v31_v45, 1  ;;  %v126_v10 = vperm.slane %v31_v45, 2 }
  0x17   :  { %96 = vmatpush.msra.mxu1 %v78_v19  ;;  %130 = vmatpush.msra.mxu2 %v122_v36  ;;  %v161_v57 = vld [vmem:[#allocation2 + $0x1e0] sm:$0xff]  ;;  %v160_v58 = vld [vmem:[#allocation2 + $0x1d8] sm:$0xff]  ;;  %v159_v59 = vld [vmem:[#allocation2 + $0x1d0] sm:$0xff]  ;;  %v165_v14 = vperm.slane %v31_v45, 3 }
  0x18   :  { %58 = vmatpush.msra.mxu0 %v38_v16  ;;  %167 = vmatpush.msra.mxu3 %v163_v55  ;;  %v158_v60 = vld [vmem:[#allocation2 + $0x1c8] sm:$0xff]  ;;  %v157_v61 = vld [vmem:[#allocation2 + $0x1c0] sm:$0xff]  ;;  %v156_v62 = vld [vmem:[#allocation2 + $0x1b8] sm:$0xff] }
  0x19   :  { %97 = vmatpush.msra.mxu1 %v77_v21  ;;  %131 = vmatpush.msra.mxu2 %v121_v37  ;;  %v155_v63 = vld [vmem:[#allocation2 + $0x1b0] sm:$0xff]  ;;  %v154_v0 = vld [vmem:[#allocation2 + $0x1a8] sm:$0xff]  ;;  %v153_v1 = vld [vmem:[#allocation2 + $0x1a0] sm:$0xff] }
  0x1a   :  { %59 = vmatpush.msra.mxu0 %v37_v18  ;;  %168 = vmatpush.msra.mxu3 %v162_v56  ;;  %v152_v2 = vld [vmem:[#allocation2 + $0x198] sm:$0xff]  ;;  %v151_v7 = vld [vmem:[#allocation2 + $0x190] sm:$0xff]  ;;  %v150_v8 = vld [vmem:[#allocation2 + $0x188] sm:$0xff] }
  0x1b   :  { %98 = vmatpush.msra.mxu1 %v76_v23  ;;  %132 = vmatpush.msra.mxu2 %v120_v38  ;;  %v149_v9 = vld [vmem:[#allocation2 + $0x180] sm:$0xff] }
  0x1c   :  { %60 = vmatpush.msra.mxu0 %v36_v20  ;;  %169 = vmatpush.msra.mxu3 %v161_v57 }
  0x1d   :  { %99 = vmatpush.msra.mxu1 %v75_v25  ;;  %133 = vmatpush.msra.mxu2 %v119_v39 }
  0x1e   :  { %61 = vmatpush.msra.mxu0 %v35_v22  ;;  %170 = vmatpush.msra.mxu3 %v160_v58 }
  0x1f   :  { %100 = vmatpush.msra.mxu1 %v74_v27  ;;  %134 = vmatpush.msra.mxu2 %v118_v40 }
  0x20   :  { %62 = vmatpush.msra.mxu0 %v34_v24  ;;  %171 = vmatpush.msra.mxu3 %v159_v59 }
  0x21   :  { %101 = vmatpush.msra.mxu1 %v73_v30  ;;  %135 = vmatpush.msra.mxu2 %v117_v41 }
  0x22   :  { %63 = vmatpush.msra.mxu0 %v33_v26  ;;  %172 = vmatpush.msra.mxu3 %v158_v60 }
  0x23   :  { %102 = vmatpush.msra.mxu1 %v72_v31  ;;  %136 = vmatpush.msra.mxu2 %v116_v42 }
  0x24   :  { %64 = vmatpush.msra.mxu0 %v32_v28  ;;  %173 = vmatpush.msra.mxu3 %v157_v61 }
  0x25   :  { %65 = vmatmul.f32.vlgmr.msra.gmra.mxu0 %v30_v29  ;;  %103 = vmatpush.msra.mxu1 %v71_v32 }
  0x26   :  { %137 = vmatpush.msra.mxu2 %v115_v43  ;;  %174 = vmatpush.msra.mxu3 %v156_v62 }
  0x28   :  { %138 = vmatpush.msra.mxu2 %v114_v44  ;;  %175 = vmatpush.msra.mxu3 %v155_v63 }
  0x2a   :  { %139 = vmatpush.msra.mxu2 %v113_v46  ;;  %176 = vmatpush.msra.mxu3 %v154_v0 }
  0x2c   :  { %140 = vmatpush.msra.mxu2 %v112_v51  ;;  %177 = vmatpush.msra.mxu3 %v153_v1 }
  0x2e   :  { %141 = vmatpush.msra.mxu2 %v111_v52  ;;  %178 = vmatpush.msra.mxu3 %v152_v2 }
  0x30   :  { %142 = vmatpush.msra.mxu2 %v110_v53  ;;  %179 = vmatpush.msra.mxu3 %v151_v7 }
  0x32   :  { %180 = vmatpush.msra.mxu3 %v150_v8 }
  0x34   :  { %181 = vmatpush.msra.mxu3 %v149_v9 }
  0xa2   :  { %v66_v48 = vpop.f32.mrf.mxu0 }
  0xa3   :  { %v67_v49 = vadd.f32 %v66_v48, %v48_v47 }
  0xa5   :  { %v69_v50 = vmax.f32 %v67_v49, 0.0 }
  0xa7   :  { %104 = vmatmul.f32.vlgmr.msra.gmra.mxu1 %v69_v50 }
 0x124   :  { %v105_v4 = vpop.f32.mrf.mxu1 }
 0x125   :  { %v106_v5 = vadd.f32 %v105_v4, %v87_v3 }
 0x127   :  { %v108_v6 = vmax.f32 %v106_v5, 0.0 }
 0x129   :  { %143 = vmatmul.f32.vlgmr.msra.gmra.mxu2 %v108_v6 }
 0x1ac   :  { %v144_v11 = vpop.f32.mrf.mxu2 }
 0x1ad   :  { %v145_v12 = vadd.f32 %v144_v11, %v126_v10 }
 0x1af   :  { %v147_v13 = vmax.f32 %v145_v12, 0.0 }
 0x1b1   :  { %182 = vmatmul.f32.vlgmr.msra.gmra.mxu3 %v147_v13 }
 0x234   :  { %v183_v15 = vpop.f32.mrf.mxu3 }
 0x235   :  { %v184_v16 = vadd.f32 %v183_v15, %v165_v14 }
 0x237   :  { %186 = vst [vmem:[%s259_s3] sm:$0xff] %v184_v16 }
 0x238   :  { %191 = vsyncpa [#allocation3], 1 }

</bundles_post_ra>
